<compile_context>
chip_gen: v5e
topology: v5e:2x2
jax: 0.10.0
libtpu: 0.0.40
codegen_flags: <defaults>
</compile_context>

<pallas_src>
import numpy as np
import jax
import jax.numpy as jnp
from jax.experimental import pallas as pl
from jax.experimental.pallas import tpu as pltpu


def _round_up(x, m):
    return ((x + m - 1) // m) * m


def _pick_tk(f_in, max_tk=2048):
    """K tile: the whole F_in when small, else the largest 256-multiple divisor
    of F_in up to max_tk (falls back to max_tk + zero-padding for ragged F_in)."""
    if f_in <= max_tk:
        return f_in
    for cand in range(max_tk, 255, -256):
        if f_in % cand == 0:
            return cand
    return max_tk


def _tiles(B, f_in, compute_dtype, tb, tk):
    """Resolve hardware-aligned (tb, tk) and padded extents (b_pad, k_pad)."""
    sub = 16 if np.dtype(compute_dtype).itemsize == 2 else 8   # bf16 packs 16 rows
    if tk is None:
        tk = _pick_tk(f_in)
    if tk >= f_in:
        # Single K block: block dim == full (padded) array dim satisfies (8,128).
        k_pad = _round_up(f_in, sub)
        tk = k_pad
    else:
        tk = _round_up(tk, 128)                                # lane constraint
        k_pad = _round_up(f_in, tk)
    if tb is None:
        # Whole batch in one block when possible -> w1 streamed once per K-chunk.
        # TODO(synk): on v7x, prefer exactly two batch blocks (tb ~ cdiv(B,2)) so
        # dimension_semantics="parallel" shards the batch across its 2 TensorCores.
        tb = min(1024, _round_up(B, sub))
    tb = _round_up(tb, sub)
    b_pad = _round_up(B, tb)
    return tb, tk, b_pad, k_pad


# ----------------------------------------------------------------------------
# Fused two-matmul kernel (exact original structure), K-tiled + batch-tiled.
# grid = (B/tb, F_in/tk); reduction axis (k) last.
# ----------------------------------------------------------------------------
def _fused_kernel(x_ref, w1_ref, b1_ref, w2_ref, b2_ref, o_ref, h_acc):
    k = pl.program_id(1)

    @pl.when(k == 0)
    def _():
        # Fold the first bias into the accumulator init (saves an epilogue add).
        h_acc[...] = jnp.broadcast_to(b1_ref[...], h_acc.shape)

    # Partial linear1: accumulate x_k @ w1_k (MXU, f32 accumulation).
    h_acc[...] += jnp.dot(x_ref[...], w1_ref[...],
                          preferred_element_type=jnp.float32)

    @pl.when(k == pl.num_programs(1) - 1)
    def _():
        # Small second matmul on the lane-padded (128-wide) w2, then bias.
        out = jnp.dot(h_acc[...], w2_ref[...],
                      preferred_element_type=jnp.float32)
        o_ref[...] = (out + b2_ref[...]).astype(o_ref.dtype)


def projection_z(x, w1, b1, w2, b2, *, latent_dim, data_seqlen,
                 compute_dtype=jnp.bfloat16, tb=None, tk=None):
    """Fused ProjectionZ forward: (x.view(-1,F_in) @ w1 + b1) @ w2 + b2."""
    f_in = latent_dim * 4 * (data_seqlen // 4)
    x2d = x.reshape(-1, f_in)                       # x.view(-1, F_in)
    B = x2d.shape[0]
    hidden = w1.shape[1]
    z_dim = w2.shape[1]
    z_pad = _round_up(z_dim, 128)                   # lane-dense out / full MXU cols
    out_dtype = x.dtype

    # Stream only the dominant HBM traffic (x, w1) in compute_dtype (bf16 by
    # default: halves HBM bytes, MXU-native); accumulation, biases and the tiny
    # second matmul stay f32 (v5e has no bf16 VPU path).
    x2d = x2d.astype(compute_dtype)
    w1c = w1.astype(compute_dtype)
    w2p = jnp.pad(w2.astype(jnp.float32), ((0, 0), (0, z_pad - z_dim)))
    b1_2d = b1.reshape(1, hidden).astype(jnp.float32)
    b2_2d = jnp.pad(b2.reshape(1, z_dim).astype(jnp.float32),
                    ((0, 0), (0, z_pad - z_dim)))

    tb, tk, b_pad, k_pad = _tiles(B, f_in, compute_dtype, tb, tk)

    # Pads only hit ragged shapes (batch tail / ragged F_in); zero rows/cols are
    # matmul no-ops.  The w1 pad is weight-only (constant-folds under jit).
    if b_pad != B or k_pad != f_in:
        x2d = jnp.pad(x2d, ((0, b_pad - B), (0, k_pad - f_in)))
    if k_pad != f_in:
        w1c = jnp.pad(w1c, ((0, k_pad - f_in), (0, 0)))

    grid = (b_pad // tb, k_pad // tk)
    nb, nk = grid

    itemsize = np.dtype(compute_dtype).itemsize
    out_itemsize = np.dtype(out_dtype).itemsize
    cost = pl.CostEstimate(
        flops=2 * B * f_in * hidden + 2 * B * hidden * z_pad,
        transcendentals=0,
        bytes_accessed=int(x2d.size * itemsize
                           + nb * w1c.size * itemsize        # w1 per batch block
                           + (hidden * z_pad + hidden + z_pad) * 4
                           + b_pad * z_pad * out_itemsize),
    )

    # VMEM: double-buffered x/w1 tiles + resident b1/w2/b2 + f32 h accumulator
    # + output block.  Cap at v7x's 64 MiB physical VMEM (fine on v5e/v6e too),
    # floor at the 32 MiB scoped default.
    vmem_need = (2 * (tb * tk + tk * hidden) * itemsize
                 + 2 * (hidden + hidden * z_pad + z_pad) * 4
                 + tb * hidden * 4
                 + 2 * tb * z_pad * out_itemsize)
    vmem_limit = int(min(64 * 1024 * 1024, max(32 * 1024 * 1024, 2 * vmem_need)))

    out = pl.pallas_call(
        _fused_kernel,
        out_shape=jax.ShapeDtypeStruct((b_pad, z_pad), out_dtype),
        grid=grid,
        in_specs=[
            pl.BlockSpec((tb, tk), lambda b, k: (b, k)),          # x tile
            pl.BlockSpec((tk, hidden), lambda b, k: (k, 0)),      # w1 K-chunk
            pl.BlockSpec((1, hidden), lambda b, k: (0, 0)),       # b1 (resident)
            pl.BlockSpec((hidden, z_pad), lambda b, k: (0, 0)),   # w2 (resident)
            pl.BlockSpec((1, z_pad), lambda b, k: (0, 0)),        # b2 (resident)
        ],
        out_specs=pl.BlockSpec((tb, z_pad), lambda b, k: (b, 0)),
        scratch_shapes=[pltpu.VMEM((tb, hidden), jnp.float32)],
        compiler_params=pltpu.CompilerParams(
            dimension_semantics=("parallel", "arbitrary"),
            vmem_limit_bytes=vmem_limit,
        ),
        cost_estimate=cost,
    )(x2d, w1c, b1_2d, w2p, b2_2d)

    return out[:B, :z_dim]


# ----------------------------------------------------------------------------
# Algebraically folded variant: one matmul, ~hidden/z_dim x less weight traffic.
# The fold is weight-only: do it ONCE at weight-load time via fold_params().
# ----------------------------------------------------------------------------
def fold_params(w1, b1, w2, b2):
    """(x@w1+b1)@w2+b2 == x@(w1@w2) + (b1@w2+b2).  Hoist out of the forward."""
    w1f = w1.astype(jnp.float32)
    w2f = w2.astype(jnp.float32)
    w_fold = jnp.dot(w1f, w2f, preferred_element_type=jnp.float32)     # (F_in, z)
    b_fold = (jnp.dot(b1.reshape(1, -1).astype(jnp.float32), w2f,
                      preferred_element_type=jnp.float32)
              + b2.reshape(1, -1).astype(jnp.float32))                  # (1, z)
    return w_fold, b_fold


def _folded_kernel(x_ref, w_ref, b_ref, o_ref, acc):
    k = pl.program_id(1)

    @pl.when(k == 0)
    def _():
        acc[...] = jnp.broadcast_to(b_ref[...], acc.shape)

    acc[...] += jnp.dot(x_ref[...], w_ref[...],
                        preferred_element_type=jnp.float32)

    @pl.when(k == pl.num_programs(1) - 1)
    def _():
        o_ref[...] = acc[...].astype(o_ref.dtype)


def projection_z_folded(x, w_fold, b_fold, *, latent_dim, data_seqlen,
                        compute_dtype=jnp.bfloat16, tb=None, tk=None):
    """Folded ProjectionZ forward: x.view(-1,F_in) @ w_fold + b_fold."""
    f_in = latent_dim * 4 * (data_seqlen // 4)
    x2d = x.reshape(-1, f_in)
    B = x2d.shape[0]
    z_dim = w_fold.shape[1]
    z_pad = _round_up(z_dim, 128)
    out_dtype = x.dtype

    x2d = x2d.astype(compute_dtype)
    w = jnp.pad(w_fold.astype(compute_dtype), ((0, 0), (0, z_pad - z_dim)))
    b = jnp.pad(b_fold.reshape(1, z_dim).astype(jnp.float32),
                ((0, 0), (0, z_pad - z_dim)))

    tb, tk, b_pad, k_pad = _tiles(B, f_in, compute_dtype, tb, tk)

    if b_pad != B or k_pad != f_in:
        x2d = jnp.pad(x2d, ((0, b_pad - B), (0, k_pad - f_in)))
    if k_pad != f_in:
        w = jnp.pad(w, ((0, k_pad - f_in), (0, 0)))

    grid = (b_pad // tb, k_pad // tk)
    nb, nk = grid

    itemsize = np.dtype(compute_dtype).itemsize
    out_itemsize = np.dtype(out_dtype).itemsize
    cost = pl.CostEstimate(
        flops=2 * B * f_in * z_pad,
        transcendentals=0,
        bytes_accessed=int(x2d.size * itemsize + nb * w.size * itemsize
                           + z_pad * 4 + b_pad * z_pad * out_itemsize),
    )

    vmem_need = (2 * (tb * tk + tk * z_pad) * itemsize
                 + 2 * z_pad * 4
                 + tb * z_pad * 4
                 + 2 * tb * z_pad * out_itemsize)
    vmem_limit = int(min(64 * 1024 * 1024, max(32 * 1024 * 1024, 2 * vmem_need)))

    out = pl.pallas_call(
        _folded_kernel,
        out_shape=jax.ShapeDtypeStruct((b_pad, z_pad), out_dtype),
        grid=grid,
        in_specs=[
            pl.BlockSpec((tb, tk), lambda bi, k: (bi, k)),       # x tile
            pl.BlockSpec((tk, z_pad), lambda bi, k: (k, 0)),     # folded weight K-chunk
            pl.BlockSpec((1, z_pad), lambda bi, k: (0, 0)),      # folded bias (resident)
        ],
        out_specs=pl.BlockSpec((tb, z_pad), lambda bi, k: (bi, 0)),
        scratch_shapes=[pltpu.VMEM((tb, z_pad), jnp.float32)],
        compiler_params=pltpu.CompilerParams(
            dimension_semantics=("parallel", "arbitrary"),
            vmem_limit_bytes=vmem_limit,
        ),
        cost_estimate=cost,
    )(x2d, w, b)

    return out[:B, :z_dim]


# ----------------------------------------------------------------------------
# Parameter init mimicking nn.Linear (uniform(-1/sqrt(fan_in), +)).
# ----------------------------------------------------------------------------
def init_params(key, latent_dim, data_seqlen, z_dim, dtype=jnp.float32):
    f_in = latent_dim * 4 * (data_seqlen // 4)
    hidden = 1024
    k1, k2, k3, k4 = jax.random.split(key, 4)
    lim1 = 1.0 / float(np.sqrt(f_in))
    lim2 = 1.0 / float(np.sqrt(hidden))
    # weights stored already transposed to (in, out) for y = x @ W
    w1 = jax.random.uniform(k1, (f_in, hidden), dtype, -lim1, lim1)
    b1 = jax.random.uniform(k2, (hidden,), dtype, -lim1, lim1)
    w2 = jax.random.uniform(k3, (hidden, z_dim), dtype, -lim2, lim2)
    b2 = jax.random.uniform(k4, (z_dim,), dtype, -lim2, lim2)
    return w1, b1, w2, b2


if __name__ == "__main__":
    data_seqlen = 8
    latent_dim = 4
    z_dim = 32
    batch = 2

    key = jax.random.PRNGKey(0)
    kx, kp = jax.random.split(key)
    f_in = latent_dim * 4 * (data_seqlen // 4)              # = 32

    # Input shaped like the conv-stack output the module expects:
    # (batch, latent_dim * 4, data_seqlen // 4) -> flattened inside the wrapper.
    x = jax.random.normal(kx, (batch, latent_dim * 4, data_seqlen // 4),
                          dtype=jnp.float32)
    w1, b1, w2, b2 = init_params(kp, latent_dim, data_seqlen, z_dim)

    # Pure-JAX reference of the module semantics.
    ref = (x.reshape(-1, f_in) @ w1 + b1) @ w2 + b2

    # 1) Fused two-matmul kernel, f32 streaming.
    out_f32 = jax.block_until_ready(
        projection_z(x, w1, b1, w2, b2, latent_dim=latent_dim,
                     data_seqlen=data_seqlen, compute_dtype=jnp.float32))
    assert out_f32.shape == (batch, z_dim)
    assert jnp.allclose(out_f32, ref, atol=2e-2, rtol=2e-2)

    # 2) Default bf16-streamed variant (halves dominant HBM traffic; f32 accum).
    out_bf16 = jax.block_until_ready(
        projection_z(x, w1, b1, w2, b2, latent_dim=latent_dim,
                     data_seqlen=data_seqlen))
    assert out_bf16.shape == (batch, z_dim)
    assert jnp.allclose(out_bf16, ref, atol=5e-2, rtol=5e-2)

    # 3) Folded single-matmul kernel (fold hoisted; f32 and bf16 streaming).
    w_fold, b_fold = fold_params(w1, b1, w2, b2)
    out_fold = jax.block_until_ready(
        projection_z_folded(x, w_fold, b_fold, latent_dim=latent_dim,
                            data_seqlen=data_seqlen, compute_dtype=jnp.float32))
    assert jnp.allclose(out_fold, ref, atol=2e-2, rtol=2e-2)

    out_fold_bf16 = jax.block_until_ready(
        projection_z_folded(x, w_fold, b_fold, latent_dim=latent_dim,
                            data_seqlen=data_seqlen))
    assert jnp.allclose(out_fold_bf16, ref, atol=5e-2, rtol=5e-2)

    print("KERNEL_OK")
</pallas_src>

<mosaic_0001>
module attributes {stable_mosaic.version = 11 : i64} {
  func.func @_fused_kernel(%arg0: i32, %arg1: i32, %arg2: memref<8x32xf32, #tpu.memory_space<vmem>>, %arg3: memref<32x1024xf32, #tpu.memory_space<vmem>>, %arg4: memref<1x1024xf32, #tpu.memory_space<vmem>>, %arg5: memref<1024x128xf32, #tpu.memory_space<vmem>>, %arg6: memref<1x128xf32, #tpu.memory_space<vmem>>, %arg7: memref<8x128xf32, #tpu.memory_space<vmem>>, %arg8: memref<8x1024xf32, #tpu.memory_space<vmem>>) attributes {dimension_semantics = [#tpu.dimension_semantics<parallel>, #tpu.dimension_semantics<arbitrary>], iteration_bounds = array<i64: 1, 1>, scalar_prefetch = 0 : i64, scratch_operands = 1 : i64, tpu.core_type = #tpu.core_type<tc>, window_params = [{transform_indices = @transform_0, window_bounds = array<i64: 8, 32>}, {transform_indices = @transform_1, window_bounds = array<i64: 32, 1024>}, {pipeline_mode = #tpu.pipeline_mode<synchronous>, transform_indices = @transform_2, window_bounds = array<i64: 1, 1024>}, {pipeline_mode = #tpu.pipeline_mode<synchronous>, transform_indices = @transform_3, window_bounds = array<i64: 1024, 128>}, {pipeline_mode = #tpu.pipeline_mode<synchronous>, transform_indices = @transform_4, window_bounds = array<i64: 1, 128>}, {transform_indices = @transform_5, window_bounds = array<i64: 8, 128>}]} {
    %c0_i32 = arith.constant 0 : i32
    %0 = arith.cmpi eq, %arg1, %c0_i32 : i32
    %1 = arith.extui %0 : i1 to i32
    %c0_i32_0 = arith.constant 0 : i32
    %2 = arith.cmpi ne, %1, %c0_i32_0 : i32
    scf.if %2 {
      %c0_10 = arith.constant 0 : index
      %c0_11 = arith.constant 0 : index
      %12 = vector.load %arg4[%c0_10, %c0_11] : memref<1x1024xf32, #tpu.memory_space<vmem>>, vector<1x1024xf32>
      %13 = vector.shape_cast %12 : vector<1x1024xf32> to vector<1x1024xf32>
      %14 = vector.broadcast %13 : vector<1x1024xf32> to vector<8x1024xf32>
      %c0_12 = arith.constant 0 : index
      %c0_13 = arith.constant 0 : index
      %15 = vector.load %arg8[%c0_12, %c0_13] : memref<8x1024xf32, #tpu.memory_space<vmem>>, vector<8x1024xf32>
      tpu.vector_store %arg8[%c0_12, %c0_13], %14 {strides = array<i32>} : memref<8x1024xf32, #tpu.memory_space<vmem>>, vector<8x1024xf32>,
    } else {
    }
    %c0 = arith.constant 0 : index
    %c0_1 = arith.constant 0 : index
    %3 = vector.load %arg8[%c0, %c0_1] : memref<8x1024xf32, #tpu.memory_space<vmem>>, vector<8x1024xf32>
    %c0_2 = arith.constant 0 : index
    %c0_3 = arith.constant 0 : index
    %4 = vector.load %arg2[%c0_2, %c0_3] : memref<8x32xf32, #tpu.memory_space<vmem>>, vector<8x32xf32>
    %c0_4 = arith.constant 0 : index
    %c0_5 = arith.constant 0 : index
    %5 = vector.load %arg3[%c0_4, %c0_5] : memref<32x1024xf32, #tpu.memory_space<vmem>>, vector<32x1024xf32>
    %cst = arith.constant dense<0.000000e+00> : vector<8x1024xf32>
    %6 = tpu.matmul %4, %5, %cst {dimension_numbers = #tpu.dot_dimension_numbers<[1], [0], [0], [1], [0, 0, 1, 1], [], []>} : vector<8x32xf32>, vector<32x1024xf32>, vector<8x1024xf32> -> vector<8x1024xf32>
    %7 = arith.addf %3, %6 : vector<8x1024xf32>
    %c0_6 = arith.constant 0 : index
    %c0_7 = arith.constant 0 : index
    %8 = vector.load %arg8[%c0_6, %c0_7] : memref<8x1024xf32, #tpu.memory_space<vmem>>, vector<8x1024xf32>
    tpu.vector_store %arg8[%c0_6, %c0_7], %7 {strides = array<i32>} : memref<8x1024xf32, #tpu.memory_space<vmem>>, vector<8x1024xf32>,
    %c0_i32_8 = arith.constant 0 : i32
    %9 = arith.cmpi eq, %arg1, %c0_i32_8 : i32
    %10 = arith.extui %9 : i1 to i32
    %c0_i32_9 = arith.constant 0 : i32
    %11 = arith.cmpi ne, %10, %c0_i32_9 : i32
    scf.if %11 {
      %c0_10 = arith.constant 0 : index
      %c0_11 = arith.constant 0 : index
      %12 = vector.load %arg8[%c0_10, %c0_11] : memref<8x1024xf32, #tpu.memory_space<vmem>>, vector<8x1024xf32>
      %c0_12 = arith.constant 0 : index
      %c0_13 = arith.constant 0 : index
      %13 = vector.load %arg5[%c0_12, %c0_13] : memref<1024x128xf32, #tpu.memory_space<vmem>>, vector<1024x128xf32>
      %cst_14 = arith.constant dense<0.000000e+00> : vector<8x128xf32>
      %14 = tpu.matmul %12, %13, %cst_14 {dimension_numbers = #tpu.dot_dimension_numbers<[1], [0], [0], [1], [0, 0, 1, 1], [], []>} : vector<8x1024xf32>, vector<1024x128xf32>, vector<8x128xf32> -> vector<8x128xf32>
      %c0_15 = arith.constant 0 : index
      %c0_16 = arith.constant 0 : index
      %15 = vector.load %arg6[%c0_15, %c0_16] : memref<1x128xf32, #tpu.memory_space<vmem>>, vector<1x128xf32>
      %16 = vector.broadcast %15 : vector<1x128xf32> to vector<8x128xf32>
      %17 = arith.addf %14, %16 : vector<8x128xf32>
      %c0_17 = arith.constant 0 : index
      %c0_18 = arith.constant 0 : index
      %18 = vector.load %arg7[%c0_17, %c0_18] : memref<8x128xf32, #tpu.memory_space<vmem>>, vector<8x128xf32>
      tpu.vector_store %arg7[%c0_17, %c0_18], %17 {strides = array<i32>} : memref<8x128xf32, #tpu.memory_space<vmem>>, vector<8x128xf32>,
    } else {
    }
    return
  }
  func.func @transform_0(%arg0: i32, %arg1: i32) -> (i32, i32) {
    %c0_i32 = arith.constant 0 : i32
    return %arg0, %arg1 : i32, i32
  }
  func.func @transform_1(%arg0: i32, %arg1: i32) -> (i32, i32) {
    %c0_i32 = arith.constant 0 : i32
    %c0_i32_0 = arith.constant 0 : i32
    return %arg1, %c0_i32 : i32, i32
  }
  func.func @transform_2(%arg0: i32, %arg1: i32) -> (i32, i32) {
    %c0_i32 = arith.constant 0 : i32
    %c0_i32_0 = arith.constant 0 : i32
    %c0_i32_1 = arith.constant 0 : i32
    return %c0_i32, %c0_i32_0 : i32, i32
  }
  func.func @transform_3(%arg0: i32, %arg1: i32) -> (i32, i32) {
    %c0_i32 = arith.constant 0 : i32
    %c0_i32_0 = arith.constant 0 : i32
    %c0_i32_1 = arith.constant 0 : i32
    return %c0_i32, %c0_i32_0 : i32, i32
  }
  func.func @transform_4(%arg0: i32, %arg1: i32) -> (i32, i32) {
    %c0_i32 = arith.constant 0 : i32
    %c0_i32_0 = arith.constant 0 : i32
    %c0_i32_1 = arith.constant 0 : i32
    return %c0_i32, %c0_i32_0 : i32, i32
  }
  func.func @transform_5(%arg0: i32, %arg1: i32) -> (i32, i32) {
    %c0_i32 = arith.constant 0 : i32
    %c0_i32_0 = arith.constant 0 : i32
    return %arg0, %c0_i32 : i32, i32
  }
}

</mosaic_0001>

<bundles_post_ra>
// kernel: tpu_custom_call.1
= control target key start
LH: loop header
LB: loop body
LE: loop exit
PB: predicated region body
PF: predicated region fallthrough
CT: control target
= control target key end

     0   :  { %10 = vsyncpa [#allocation4], 0  ;;  %s875_s0 = inlined_call_operand.hbm [shape: f32[8,32], index: 0, kind: input, shape index: {}]   ;;  %s876_s1 = inlined_call_operand.hbm [shape: f32[32,1024], index: 1, kind: input, shape index: {}]   ;;  %s877_s2 = inlined_call_operand.hbm [shape: f32[1,1024], index: 2, kind: input, shape index: {}]   ;;  %s878_s3 = inlined_call_operand.hbm [shape: f32[1024,128], index: 3, kind: input, shape index: {}]   ;;  %s879_s4 = inlined_call_operand.vmem [shape: f32[1,128], index: 4, kind: input, shape index: {}]   ;;  %s880_s5 = inlined_call_operand.hbm [shape: f32[8,128], index: 5, kind: output, shape index: {}]  }
   0x1   :  { %11 = vsyncpa [#allocation7], 0 }
   0x2   :  { %12 = vsyncpa [#allocation10], 0  ;;  %s29_s20 = sshll.u32 %s876_s1, 4  ;;  %s30_s20 = int_to_ptr.hbm [resolvable:$true] %s29_s20 }
   0x3   :  { %13 = vsyncpa [#allocation5], 0  ;;  %s800_s21 = smov [#allocation6]   ;;  %s19_s25 = sshll.u32 %s875_s0, 4  ;;  %s20_s25 = int_to_ptr.hbm [resolvable:$true] %s19_s25 }
   0x4   :  { %s31_s22 = sshll.u32 %s800_s21, 4  ;;  %s801_s26 = smov 1024   ;;  %s32_s22 = int_to_ptr.vmem [resolvable:$true] %s31_s22 }
   0x5   :  { %s802_s27 = smov 64   ;;  %s803_s28 = smov [#allocation3]  }
   0x6   :  { %37 = dma.hbm_to_vmem [thread:$0]  %s30_s20, 4096, %s32_s22, [#allocation7], %s801_s26, %s801_s26, %s802_s27  }
   0x7   :  { %s21_s29 = sshll.u32 %s803_s28, 4  ;;  %s43_s7 = sshll.u32 %s877_s2, 4  ;;  %s22_s29 = int_to_ptr.vmem [resolvable:$true] %s21_s29  ;;  %s44_s7 = int_to_ptr.hbm [resolvable:$true] %s43_s7 }
   0x8   :  { %24 = dma.hbm_to_vmem [thread:$0]  %s20_s25, 128, %s22_s29, [#allocation4]  }
   0x9   :  { %s53_s9 = sshll.u32 %s878_s3, 4  ;;  %s804_s10 = smov [#allocation8]   ;;  %s54_s9 = int_to_ptr.hbm [resolvable:$true] %s53_s9 }
   0xa   :  { %s45_s11 = sshll.u32 %s804_s10, 4  ;;  %s805_s0 = smov [#allocation9]   ;;  %s46_s11 = int_to_ptr.vmem [resolvable:$true] %s45_s11 }
   0xb   :  { %48 = dma.hbm_to_vmem [thread:$0]  %s44_s7, 128, %s46_s11, [#allocation7]  }
   0xc   :  { %s55_s12 = sshll.u32 %s805_s0, 4  ;;  %s806_s13 = smov 128   ;;  %s56_s12 = int_to_ptr.vmem [resolvable:$true] %s55_s12 }
   0xd   :  { %s807_s14 = smov 8  }
   0xe   :  { %61 = dma.hbm_to_vmem [thread:$0]  %s54_s9, 16384, %s56_s12, [#allocation10], %s806_s13, %s806_s13, %s807_s14  }
   0xf   :  { %792 = dma.done.wait [#allocation4], 128  }
  0x10   :  { %793 = vsyncadd [#allocation4], 4294967168 }
  0x11   :  { %794 = dma.done.wait [#allocation7], 4224  }
  0x12   :  { %795 = vsyncadd [#allocation7], 4294963072 }
  0x13   :  { %796 = dma.done.wait [#allocation10], 16384  }
  0x14   :  { %797 = vsyncadd [#allocation10], 4294950912  ;;  %v145_v0 = vld [vmem:[#allocation6 + $0xd0] sm:$0xff]  ;;  %v146_v2 = vld [vmem:[#allocation6 + $0xd8] sm:$0xff]  ;;  %vm151_vm0 = vcmask 261120   ;;  %s808_s15 = smov [#allocation11]  }
  0x15   :  { %v137_v1 = vld [vmem:[#allocation6 + $0x90] sm:$0xff]  ;;  %207 = vmatpush.msra.mxu2 %v145_v0  ;;  %227 = vmatpush.msra.mxu3 %v146_v2  ;;  %v138_v3 = vld [vmem:[#allocation6 + $0x98] sm:$0xff]  ;;  %v143_v7 = vld [vmem:[#allocation6 + $0xc0] sm:$0xff]  ;;  %s640_s16 = sshll.u32 %s808_s15, 4  ;;  %s642_s19 = sshll.u32 %s880_s5, 4  ;;  %s641_s16 = int_to_ptr.vmem [resolvable:$true] %s640_s16  ;;  %s643_s19 = int_to_ptr.hbm [resolvable:$true] %s642_s19 }
  0x16   :  { %v129_v4 = vld [vmem:[#allocation6 + $0x50] sm:$0xff]  ;;  %v130_v5 = vld [vmem:[#allocation6 + $0x58] sm:$0xff]  ;;  %167 = vmatpush.msra.mxu0 %v143_v7  ;;  %v135_v9 = vld [vmem:[#allocation6 + $0x80] sm:$0xff] }
  0x17   :  { %208 = vmatpush.msra.mxu2 %v137_v1  ;;  %228 = vmatpush.msra.mxu3 %v138_v3  ;;  %v121_v6 = vld [vmem:[#allocation6 + $0x10] sm:$0xff]  ;;  %v122_v8 = vld [vmem:[#allocation6 + $0x18] sm:$0xff]  ;;  %v144_v10 = vld [vmem:[#allocation6 + $0xc8] sm:$0xff] }
  0x18   :  { %v851_v11 = vld [vmem:[#allocation3] sm:$0xff]  ;;  %v149_v12 = vld [vmem:[#allocation6 + $0xf0] sm:$0xff]  ;;  %168 = vmatpush.msra.mxu0 %v135_v9  ;;  %187 = vmatpush.msra.mxu1 %v144_v10  ;;  %v127_v14 = vld [vmem:[#allocation6 + $0x40] sm:$0xff] }
  0x19   :  { %209 = vmatpush.msra.mxu2 %v129_v4  ;;  %229 = vmatpush.msra.mxu3 %v130_v5  ;;  %v150_v13 = vld [vmem:[#allocation6 + $0xf8] sm:$0xff]  ;;  %v136_v15 = vld [vmem:[#allocation6 + $0x88] sm:$0xff]  ;;  %v141_v16 = vld [vmem:[#allocation6 + $0xb0] sm:$0xff] }
  0x1a   :  { %v142_v17 = vld [vmem:[#allocation6 + $0xb8] sm:$0xff]  ;;  %v119_v18 = vld [vmem:[#allocation6] sm:$0xff]  ;;  %v128_v19 = vld [vmem:[#allocation6 + $0x48] sm:$0xff]  ;;  %169 = vmatpush.msra.mxu0 %v127_v14  ;;  %188 = vmatpush.msra.mxu1 %v136_v15 }
  0x1b   :  { %210 = vmatpush.msra.mxu2 %v121_v6  ;;  %230 = vmatpush.msra.mxu3 %v122_v8  ;;  %v133_v20 = vld [vmem:[#allocation6 + $0x70] sm:$0xff]  ;;  %v134_v21 = vld [vmem:[#allocation6 + $0x78] sm:$0xff]  ;;  %v120_v22 = vld [vmem:[#allocation6 + $0x8] sm:$0xff] }
  0x1c   :  { %656 = vmatmul.msk.f32.vlgmr.msra.gmra.mxu2 %vm151_vm0, %v851_v11  ;;  %657 = vmatmul.msk.f32.vlgmr.msra.gmra.mxu3 %vm151_vm0, %v851_v11  ;;  %v125_v23 = vld [vmem:[#allocation6 + $0x30] sm:$0xff]  ;;  %v147_v24 = vld [vmem:[#allocation6 + $0xe0] sm:$0xff]  ;;  %v126_v25 = vld [vmem:[#allocation6 + $0x38] sm:$0xff] }
  0x1d   :  { %287 = vmatpush.msrb.mxu2 %v149_v12  ;;  %307 = vmatpush.msrb.mxu3 %v150_v13  ;;  %v139_v26 = vld [vmem:[#allocation6 + $0xa0] sm:$0xff]  ;;  %v148_v27 = vld [vmem:[#allocation6 + $0xe8] sm:$0xff]  ;;  %v388_v33 = vld [vmem:[#allocation9 + $0x170] sm:$0xff] }
  0x1e   :  { %170 = vmatpush.msra.mxu0 %v119_v18  ;;  %189 = vmatpush.msra.mxu1 %v128_v19  ;;  %v131_v28 = vld [vmem:[#allocation6 + $0x60] sm:$0xff]  ;;  %v140_v30 = vld [vmem:[#allocation6 + $0xa8] sm:$0xff]  ;;  %v387_v36 = vld [vmem:[#allocation9 + $0x168] sm:$0xff] }
  0x1f   :  { %288 = vmatpush.msrb.mxu2 %v141_v16  ;;  %308 = vmatpush.msrb.mxu3 %v142_v17  ;;  %v389_v29 = vld [vmem:[#allocation9 + $0x178] sm:$0xff]  ;;  %v132_v34 = vld [vmem:[#allocation6 + $0x68] sm:$0xff]  ;;  %v404_v38 = vld [vmem:[#allocation9 + $0x1f0] sm:$0xff] }
  0x20   :  { %654 = vmatmul.msk.f32.vlgmr.msra.gmra.mxu0 %vm151_vm0, %v851_v11  ;;  %190 = vmatpush.msra.mxu1 %v120_v22  ;;  %v405_v31 = vld [vmem:[#allocation9 + $0x1f8] sm:$0xff]  ;;  %v124_v37 = vld [vmem:[#allocation6 + $0x28] sm:$0xff]  ;;  %v356_v39 = vld [vmem:[#allocation9 + $0x70] sm:$0xff] }
  0x21   :  { %289 = vmatpush.msrb.mxu2 %v133_v20  ;;  %309 = vmatpush.msrb.mxu3 %v134_v21  ;;  %v123_v32 = vld [vmem:[#allocation6 + $0x20] sm:$0xff]  ;;  %v386_v41 = vld [vmem:[#allocation9 + $0x160] sm:$0xff]  ;;  %v355_v42 = vld [vmem:[#allocation9 + $0x68] sm:$0xff] }
  0x22   :  { %247 = vmatpush.msrb.mxu0 %v147_v24  ;;  %655 = vmatmul.msk.f32.vlgmr.msra.gmra.mxu1 %vm151_vm0, %v851_v11  ;;  %v357_v35 = vld [vmem:[#allocation9 + $0x78] sm:$0xff]  ;;  %v403_v43 = vld [vmem:[#allocation9 + $0x1e8] sm:$0xff]  ;;  %v372_v44 = vld [vmem:[#allocation9 + $0xf0] sm:$0xff] }
  0x23   :  { %290 = vmatpush.msrb.mxu2 %v125_v23  ;;  %310 = vmatpush.msrb.mxu3 %v126_v25  ;;  %v373_v40 = vld [vmem:[#allocation9 + $0xf8] sm:$0xff]  ;;  %v354_v46 = vld [vmem:[#allocation9 + $0x60] sm:$0xff]  ;;  %v371_v48 = vld [vmem:[#allocation9 + $0xe8] sm:$0xff] }
  0x24   :  { %660 = vmatmul.msk.f32.vlgmr.msrb.gmra.mxu2 %vm151_vm0, %v851_v11  ;;  %248 = vmatpush.msrb.mxu0 %v139_v26  ;;  %v385_v45 = vld [vmem:[#allocation9 + $0x158] sm:$0xff]  ;;  %v402_v47 = vld [vmem:[#allocation9 + $0x1e0] sm:$0xff]  ;;  %v384_v49 = vld [vmem:[#allocation9 + $0x150] sm:$0xff] }
  0x25   :  { %267 = vmatpush.msrb.mxu1 %v148_v27  ;;  %661 = vmatmul.msk.f32.vlgmr.msrb.gmra.mxu3 %vm151_vm0, %v851_v11  ;;  %v353_v50 = vld [vmem:[#allocation9 + $0x58] sm:$0xff]  ;;  %v370_v52 = vld [vmem:[#allocation9 + $0xe0] sm:$0xff]  ;;  %v383_v53 = vld [vmem:[#allocation9 + $0x148] sm:$0xff] }
  0x26   :  { %249 = vmatpush.msrb.mxu0 %v131_v28  ;;  %514 = vmatpush.msra.mxu2 %v389_v29  ;;  %v401_v51 = vld [vmem:[#allocation9 + $0x1d8] sm:$0xff]  ;;  %v352_v54 = vld [vmem:[#allocation9 + $0x50] sm:$0xff]  ;;  %v382_v57 = vld [vmem:[#allocation9 + $0x140] sm:$0xff] }
  0x27   :  { %268 = vmatpush.msrb.mxu1 %v140_v30  ;;  %534 = vmatpush.msra.mxu3 %v405_v31  ;;  %v400_v55 = vld [vmem:[#allocation9 + $0x1d0] sm:$0xff]  ;;  %v369_v56 = vld [vmem:[#allocation9 + $0xd8] sm:$0xff]  ;;  %v351_v58 = vld [vmem:[#allocation9 + $0x48] sm:$0xff] }
  0x28   :  { %250 = vmatpush.msrb.mxu0 %v123_v32  ;;  %515 = vmatpush.msra.mxu2 %v388_v33  ;;  %v399_v59 = vld [vmem:[#allocation9 + $0x1c8] sm:$0xff]  ;;  %v368_v60 = vld [vmem:[#allocation9 + $0xd0] sm:$0xff]  ;;  %v381_v61 = vld [vmem:[#allocation9 + $0x138] sm:$0xff] }
  0x29   :  { %269 = vmatpush.msrb.mxu1 %v132_v34  ;;  %658 = vmatmul.msk.f32.vlgmr.msrb.gmra.mxu0 %vm151_vm0, %v851_v11  ;;  %v350_v62 = vld [vmem:[#allocation9 + $0x40] sm:$0xff]  ;;  %v367_v0 = vld [vmem:[#allocation9 + $0xc8] sm:$0xff]  ;;  %v380_v1 = vld [vmem:[#allocation9 + $0x130] sm:$0xff] }
  0x2a   :  { %474 = vmatpush.msra.mxu0 %v357_v35  ;;  %516 = vmatpush.msra.mxu2 %v387_v36  ;;  %v398_v63 = vld [vmem:[#allocation9 + $0x1c0] sm:$0xff]  ;;  %v349_v2 = vld [vmem:[#allocation9 + $0x38] sm:$0xff]  ;;  %v379_v5 = vld [vmem:[#allocation9 + $0x128] sm:$0xff] }
  0x2b   :  { %270 = vmatpush.msrb.mxu1 %v124_v37  ;;  %535 = vmatpush.msra.mxu3 %v404_v38  ;;  %v397_v3 = vld [vmem:[#allocation9 + $0x1b8] sm:$0xff]  ;;  %v366_v4 = vld [vmem:[#allocation9 + $0xc0] sm:$0xff]  ;;  %v348_v6 = vld [vmem:[#allocation9 + $0x30] sm:$0xff] }
  0x2c   :  { %659 = vmatmul.msk.f32.vlgmr.msrb.gmra.mxu1 %vm151_vm0, %v851_v11  ;;  %475 = vmatpush.msra.mxu0 %v356_v39  ;;  %v396_v7 = vld [vmem:[#allocation9 + $0x1b0] sm:$0xff]  ;;  %v365_v8 = vld [vmem:[#allocation9 + $0xb8] sm:$0xff]  ;;  %v378_v9 = vld [vmem:[#allocation9 + $0x120] sm:$0xff] }
  0x2d   :  { %494 = vmatpush.msra.mxu1 %v373_v40  ;;  %517 = vmatpush.msra.mxu2 %v386_v41  ;;  %v347_v10 = vld [vmem:[#allocation9 + $0x28] sm:$0xff]  ;;  %v364_v12 = vld [vmem:[#allocation9 + $0xb0] sm:$0xff]  ;;  %v377_v13 = vld [vmem:[#allocation9 + $0x118] sm:$0xff] }
  0x2e   :  { %476 = vmatpush.msra.mxu0 %v355_v42  ;;  %536 = vmatpush.msra.mxu3 %v403_v43  ;;  %v395_v11 = vld [vmem:[#allocation9 + $0x1a8] sm:$0xff]  ;;  %v346_v14 = vld [vmem:[#allocation9 + $0x20] sm:$0xff]  ;;  %v376_v17 = vld [vmem:[#allocation9 + $0x110] sm:$0xff] }
  0x2f   :  { %495 = vmatpush.msra.mxu1 %v372_v44  ;;  %518 = vmatpush.msra.mxu2 %v385_v45  ;;  %v394_v15 = vld [vmem:[#allocation9 + $0x1a0] sm:$0xff]  ;;  %v363_v16 = vld [vmem:[#allocation9 + $0xa8] sm:$0xff]  ;;  %v345_v18 = vld [vmem:[#allocation9 + $0x18] sm:$0xff] }
  0x30   :  { %477 = vmatpush.msra.mxu0 %v354_v46  ;;  %537 = vmatpush.msra.mxu3 %v402_v47  ;;  %v393_v19 = vld [vmem:[#allocation9 + $0x198] sm:$0xff]  ;;  %v362_v20 = vld [vmem:[#allocation9 + $0xa0] sm:$0xff]  ;;  %v375_v21 = vld [vmem:[#allocation9 + $0x108] sm:$0xff] }
  0x31   :  { %496 = vmatpush.msra.mxu1 %v371_v48  ;;  %519 = vmatpush.msra.mxu2 %v384_v49  ;;  %v344_v22 = vld [vmem:[#allocation9 + $0x10] sm:$0xff]  ;;  %v361_v24 = vld [vmem:[#allocation9 + $0x98] sm:$0xff]  ;;  %v374_v25 = vld [vmem:[#allocation9 + $0x100] sm:$0xff] }
  0x32   :  { %478 = vmatpush.msra.mxu0 %v353_v50  ;;  %538 = vmatpush.msra.mxu3 %v401_v51  ;;  %v392_v23 = vld [vmem:[#allocation9 + $0x190] sm:$0xff]  ;;  %v343_v26 = vld [vmem:[#allocation9 + $0x8] sm:$0xff]  ;;  %v453_v29 = vld [vmem:[#allocation9 + $0x378] sm:$0xff] }
  0x33   :  { %497 = vmatpush.msra.mxu1 %v370_v52  ;;  %520 = vmatpush.msra.mxu2 %v383_v53  ;;  %v391_v27 = vld [vmem:[#allocation9 + $0x188] sm:$0xff]  ;;  %v360_v28 = vld [vmem:[#allocation9 + $0x90] sm:$0xff]  ;;  %v342_v30 = vld [vmem:[#allocation9] sm:$0xff] }
  0x34   :  { %479 = vmatpush.msra.mxu0 %v352_v54  ;;  %539 = vmatpush.msra.mxu3 %v400_v55  ;;  %v390_v31 = vld [vmem:[#allocation9 + $0x180] sm:$0xff]  ;;  %v359_v32 = vld [vmem:[#allocation9 + $0x88] sm:$0xff]  ;;  %v421_v33 = vld [vmem:[#allocation9 + $0x278] sm:$0xff] }
  0x35   :  { %498 = vmatpush.msra.mxu1 %v369_v56  ;;  %521 = vmatpush.msra.mxu2 %v382_v57  ;;  %v452_v34 = vld [vmem:[#allocation9 + $0x370] sm:$0xff]  ;;  %v469_v35 = vld [vmem:[#allocation9 + $0x3f8] sm:$0xff]  ;;  %v358_v36 = vld [vmem:[#allocation9 + $0x80] sm:$0xff] }
  0x36   :  { %480 = vmatpush.msra.mxu0 %v351_v58  ;;  %540 = vmatpush.msra.mxu3 %v399_v59  ;;  %v420_v37 = vld [vmem:[#allocation9 + $0x270] sm:$0xff]  ;;  %v437_v38 = vld [vmem:[#allocation9 + $0x2f8] sm:$0xff]  ;;  %v451_v39 = vld [vmem:[#allocation9 + $0x368] sm:$0xff] }
  0x37   :  { %499 = vmatpush.msra.mxu1 %v368_v60  ;;  %522 = vmatpush.msra.mxu2 %v381_v61  ;;  %v468_v40 = vld [vmem:[#allocation9 + $0x3f0] sm:$0xff]  ;;  %v419_v41 = vld [vmem:[#allocation9 + $0x268] sm:$0xff]  ;;  %v450_v43 = vld [vmem:[#allocation9 + $0x360] sm:$0xff] }
  0x38   :  { %481 = vmatpush.msra.mxu0 %v350_v62  ;;  %541 = vmatpush.msra.mxu3 %v398_v63  ;;  %v436_v42 = vld [vmem:[#allocation9 + $0x2f0] sm:$0xff]  ;;  %v467_v44 = vld [vmem:[#allocation9 + $0x3e8] sm:$0xff]  ;;  %v418_v45 = vld [vmem:[#allocation9 + $0x260] sm:$0xff] }
  0x39   :  { %500 = vmatpush.msra.mxu1 %v367_v0  ;;  %523 = vmatpush.msra.mxu2 %v380_v1  ;;  %v435_v46 = vld [vmem:[#allocation9 + $0x2e8] sm:$0xff]  ;;  %v449_v47 = vld [vmem:[#allocation9 + $0x358] sm:$0xff]  ;;  %v466_v48 = vld [vmem:[#allocation9 + $0x3e0] sm:$0xff] }
  0x3a   :  { %482 = vmatpush.msra.mxu0 %v349_v2  ;;  %542 = vmatpush.msra.mxu3 %v397_v3  ;;  %v417_v49 = vld [vmem:[#allocation9 + $0x258] sm:$0xff]  ;;  %v434_v50 = vld [vmem:[#allocation9 + $0x2e0] sm:$0xff]  ;;  %v448_v51 = vld [vmem:[#allocation9 + $0x350] sm:$0xff] }
  0x3b   :  { %501 = vmatpush.msra.mxu1 %v366_v4  ;;  %524 = vmatpush.msra.mxu2 %v379_v5  ;;  %v465_v52 = vld [vmem:[#allocation9 + $0x3d8] sm:$0xff]  ;;  %v416_v53 = vld [vmem:[#allocation9 + $0x250] sm:$0xff]  ;;  %v447_v55 = vld [vmem:[#allocation9 + $0x348] sm:$0xff] }
  0x3c   :  { %483 = vmatpush.msra.mxu0 %v348_v6  ;;  %543 = vmatpush.msra.mxu3 %v396_v7  ;;  %v433_v54 = vld [vmem:[#allocation9 + $0x2d8] sm:$0xff]  ;;  %v464_v56 = vld [vmem:[#allocation9 + $0x3d0] sm:$0xff]  ;;  %v415_v57 = vld [vmem:[#allocation9 + $0x248] sm:$0xff] }
  0x3d   :  { %502 = vmatpush.msra.mxu1 %v365_v8  ;;  %525 = vmatpush.msra.mxu2 %v378_v9  ;;  %v432_v58 = vld [vmem:[#allocation9 + $0x2d0] sm:$0xff]  ;;  %v446_v59 = vld [vmem:[#allocation9 + $0x340] sm:$0xff]  ;;  %v463_v60 = vld [vmem:[#allocation9 + $0x3c8] sm:$0xff] }
  0x3e   :  { %484 = vmatpush.msra.mxu0 %v347_v10  ;;  %544 = vmatpush.msra.mxu3 %v395_v11  ;;  %v414_v61 = vld [vmem:[#allocation9 + $0x240] sm:$0xff]  ;;  %v431_v62 = vld [vmem:[#allocation9 + $0x2c8] sm:$0xff]  ;;  %v445_v63 = vld [vmem:[#allocation9 + $0x338] sm:$0xff] }
  0x3f   :  { %503 = vmatpush.msra.mxu1 %v364_v12  ;;  %526 = vmatpush.msra.mxu2 %v377_v13  ;;  %v462_v0 = vld [vmem:[#allocation9 + $0x3c0] sm:$0xff]  ;;  %v413_v1 = vld [vmem:[#allocation9 + $0x238] sm:$0xff]  ;;  %v444_v3 = vld [vmem:[#allocation9 + $0x330] sm:$0xff] }
  0x40   :  { %485 = vmatpush.msra.mxu0 %v346_v14  ;;  %545 = vmatpush.msra.mxu3 %v394_v15  ;;  %v430_v2 = vld [vmem:[#allocation9 + $0x2c0] sm:$0xff]  ;;  %v461_v4 = vld [vmem:[#allocation9 + $0x3b8] sm:$0xff]  ;;  %v412_v5 = vld [vmem:[#allocation9 + $0x230] sm:$0xff] }
  0x41   :  { %504 = vmatpush.msra.mxu1 %v363_v16  ;;  %527 = vmatpush.msra.mxu2 %v376_v17  ;;  %v429_v6 = vld [vmem:[#allocation9 + $0x2b8] sm:$0xff]  ;;  %v443_v7 = vld [vmem:[#allocation9 + $0x328] sm:$0xff]  ;;  %v460_v8 = vld [vmem:[#allocation9 + $0x3b0] sm:$0xff] }
  0x42   :  { %486 = vmatpush.msra.mxu0 %v345_v18  ;;  %546 = vmatpush.msra.mxu3 %v393_v19  ;;  %v411_v9 = vld [vmem:[#allocation9 + $0x228] sm:$0xff]  ;;  %v428_v10 = vld [vmem:[#allocation9 + $0x2b0] sm:$0xff]  ;;  %v442_v11 = vld [vmem:[#allocation9 + $0x320] sm:$0xff] }
  0x43   :  { %505 = vmatpush.msra.mxu1 %v362_v20  ;;  %528 = vmatpush.msra.mxu2 %v375_v21  ;;  %v459_v12 = vld [vmem:[#allocation9 + $0x3a8] sm:$0xff]  ;;  %v410_v13 = vld [vmem:[#allocation9 + $0x220] sm:$0xff]  ;;  %v441_v15 = vld [vmem:[#allocation9 + $0x318] sm:$0xff] }
  0x44   :  { %487 = vmatpush.msra.mxu0 %v344_v22  ;;  %547 = vmatpush.msra.mxu3 %v392_v23  ;;  %v427_v14 = vld [vmem:[#allocation9 + $0x2a8] sm:$0xff]  ;;  %v458_v16 = vld [vmem:[#allocation9 + $0x3a0] sm:$0xff]  ;;  %v409_v17 = vld [vmem:[#allocation9 + $0x218] sm:$0xff] }
  0x45   :  { %506 = vmatpush.msra.mxu1 %v361_v24  ;;  %529 = vmatpush.msra.mxu2 %v374_v25  ;;  %v426_v18 = vld [vmem:[#allocation9 + $0x2a0] sm:$0xff]  ;;  %v440_v19 = vld [vmem:[#allocation9 + $0x310] sm:$0xff]  ;;  %v457_v20 = vld [vmem:[#allocation9 + $0x398] sm:$0xff] }
  0x46   :  { %488 = vmatpush.msra.mxu0 %v343_v26  ;;  %548 = vmatpush.msra.mxu3 %v391_v27  ;;  %v408_v21 = vld [vmem:[#allocation9 + $0x210] sm:$0xff]  ;;  %v425_v22 = vld [vmem:[#allocation9 + $0x298] sm:$0xff]  ;;  %v439_v23 = vld [vmem:[#allocation9 + $0x308] sm:$0xff] }
  0x47   :  { %507 = vmatpush.msra.mxu1 %v360_v28  ;;  %594 = vmatpush.msrb.mxu2 %v453_v29  ;;  %v456_v24 = vld [vmem:[#allocation9 + $0x390] sm:$0xff]  ;;  %v407_v25 = vld [vmem:[#allocation9 + $0x208] sm:$0xff]  ;;  %v438_v27 = vld [vmem:[#allocation9 + $0x300] sm:$0xff] }
  0x48   :  { %489 = vmatpush.msra.mxu0 %v342_v30  ;;  %549 = vmatpush.msra.mxu3 %v390_v31  ;;  %v424_v26 = vld [vmem:[#allocation9 + $0x290] sm:$0xff]  ;;  %v455_v28 = vld [vmem:[#allocation9 + $0x388] sm:$0xff]  ;;  %v406_v29 = vld [vmem:[#allocation9 + $0x200] sm:$0xff] }
  0x49   :  { %508 = vmatpush.msra.mxu1 %v359_v32  ;;  %595 = vmatpush.msrb.mxu2 %v452_v34  ;;  %v423_v30 = vld [vmem:[#allocation9 + $0x288] sm:$0xff]  ;;  %v454_v31 = vld [vmem:[#allocation9 + $0x380] sm:$0xff] }
  0x4a   :  { %554 = vmatpush.msrb.mxu0 %v421_v33  ;;  %614 = vmatpush.msrb.mxu3 %v469_v35  ;;  %v422_v32 = vld [vmem:[#allocation9 + $0x280] sm:$0xff]  ;;  %v84_v33 = vld [vmem:[#allocation8] sm:$0xff] }
  0x4b   :  { %509 = vmatpush.msra.mxu1 %v358_v36  ;;  %596 = vmatpush.msrb.mxu2 %v451_v39  ;;  %v88_v34 = vperm.slane %v84_v33, 2  ;;  %v86_v35 = vperm.slane %v84_v33, 0  ;;  %v89_v36 = vperm.slane %v84_v33, 3  ;;  %v87_v39 = vperm.slane %v84_v33, 1 }
  0x4c   :  { %555 = vmatpush.msrb.mxu0 %v420_v37  ;;  %615 = vmatpush.msrb.mxu3 %v468_v40 }
  0x4d   :  { %574 = vmatpush.msrb.mxu1 %v437_v38  ;;  %597 = vmatpush.msrb.mxu2 %v450_v43 }
  0x4e   :  { %556 = vmatpush.msrb.mxu0 %v419_v41  ;;  %616 = vmatpush.msrb.mxu3 %v467_v44 }
  0x4f   :  { %575 = vmatpush.msrb.mxu1 %v436_v42  ;;  %598 = vmatpush.msrb.mxu2 %v449_v47  ;;  %v90_v47 = vperm.slane %v84_v33, 4 }
  0x50   :  { %557 = vmatpush.msrb.mxu0 %v418_v45  ;;  %617 = vmatpush.msrb.mxu3 %v466_v48  ;;  %v93_v48 = vperm.slane %v84_v33, 7 }
  0x51   :  { %576 = vmatpush.msrb.mxu1 %v435_v46  ;;  %599 = vmatpush.msrb.mxu2 %v448_v51  ;;  %v92_v46 = vperm.slane %v84_v33, 6  ;;  %v91_v51 = vperm.slane %v84_v33, 5 }
  0x52   :  { %558 = vmatpush.msrb.mxu0 %v417_v49  ;;  %618 = vmatpush.msrb.mxu3 %v465_v52 }
  0x53   :  { %577 = vmatpush.msrb.mxu1 %v434_v50  ;;  %600 = vmatpush.msrb.mxu2 %v447_v55 }
  0x54   :  { %559 = vmatpush.msrb.mxu0 %v416_v53  ;;  %619 = vmatpush.msrb.mxu3 %v464_v56 }
  0x55   :  { %578 = vmatpush.msrb.mxu1 %v433_v54  ;;  %601 = vmatpush.msrb.mxu2 %v446_v59 }
  0x56   :  { %560 = vmatpush.msrb.mxu0 %v415_v57  ;;  %620 = vmatpush.msrb.mxu3 %v463_v60 }
  0x57   :  { %579 = vmatpush.msrb.mxu1 %v432_v58  ;;  %602 = vmatpush.msrb.mxu2 %v445_v63  ;;  %v671_v58 = vld [vmem:[%s879_s4] ss:$0 sm:$0xff] }
  0x58   :  { %561 = vmatpush.msrb.mxu0 %v414_v61  ;;  %621 = vmatpush.msrb.mxu3 %v462_v0 }
  0x59   :  { %580 = vmatpush.msrb.mxu1 %v431_v62  ;;  %603 = vmatpush.msrb.mxu2 %v444_v3 }
  0x5a   :  { %562 = vmatpush.msrb.mxu0 %v413_v1  ;;  %622 = vmatpush.msrb.mxu3 %v461_v4 }
  0x5b   :  { %581 = vmatpush.msrb.mxu1 %v430_v2  ;;  %604 = vmatpush.msrb.mxu2 %v443_v7 }
  0x5c   :  { %563 = vmatpush.msrb.mxu0 %v412_v5  ;;  %623 = vmatpush.msrb.mxu3 %v460_v8 }
  0x5d   :  { %582 = vmatpush.msrb.mxu1 %v429_v6  ;;  %605 = vmatpush.msrb.mxu2 %v442_v11 }
  0x5e   :  { %564 = vmatpush.msrb.mxu0 %v411_v9  ;;  %624 = vmatpush.msrb.mxu3 %v459_v12 }
  0x5f   :  { %583 = vmatpush.msrb.mxu1 %v428_v10  ;;  %606 = vmatpush.msrb.mxu2 %v441_v15 }
  0x60   :  { %565 = vmatpush.msrb.mxu0 %v410_v13  ;;  %625 = vmatpush.msrb.mxu3 %v458_v16 }
  0x61   :  { %584 = vmatpush.msrb.mxu1 %v427_v14  ;;  %607 = vmatpush.msrb.mxu2 %v440_v19 }
  0x62   :  { %566 = vmatpush.msrb.mxu0 %v409_v17  ;;  %626 = vmatpush.msrb.mxu3 %v457_v20 }
  0x63   :  { %585 = vmatpush.msrb.mxu1 %v426_v18  ;;  %608 = vmatpush.msrb.mxu2 %v439_v23 }
  0x64   :  { %567 = vmatpush.msrb.mxu0 %v408_v21  ;;  %627 = vmatpush.msrb.mxu3 %v456_v24 }
  0x65   :  { %586 = vmatpush.msrb.mxu1 %v425_v22  ;;  %609 = vmatpush.msrb.mxu2 %v438_v27 }
  0x66   :  { %568 = vmatpush.msrb.mxu0 %v407_v25  ;;  %628 = vmatpush.msrb.mxu3 %v455_v28 }
  0x67   :  { %587 = vmatpush.msrb.mxu1 %v424_v26 }
  0x68   :  { %569 = vmatpush.msrb.mxu0 %v406_v29  ;;  %629 = vmatpush.msrb.mxu3 %v454_v31 }
  0x69   :  { %588 = vmatpush.msrb.mxu1 %v423_v30 }
  0x6b   :  { %589 = vmatpush.msrb.mxu1 %v422_v32 }
  0x9d   :  { %v172_v38 = vpop.f32.mrf.mxu0 }
  0x9e   :  { %v315_v41 = vadd.f32 %v172_v38, %v86_v35 }
  0x9f   :  { %v212_v37 = vpop.f32.mrf.mxu2  ;;  %v232_v42 = vpop.f32.mrf.mxu3 }
  0xa0   :  { %v317_v40 = vadd.f32 %v212_v37, %v88_v34  ;;  %v318_v43 = vadd.f32 %v232_v42, %v89_v36  ;;  %v192_v44 = vpop.f32.mrf.mxu1  ;;  %490 = vmatmul.f32.vlgmr.msra.gmra.mxu0 %v315_v41 }
  0xa1   :  { %v316_v45 = vadd.f32 %v192_v44, %v87_v39 }
  0xa2   :  { %530 = vmatmul.f32.vlgmr.msra.gmra.mxu2 %v317_v40  ;;  %550 = vmatmul.f32.vlgmr.msra.gmra.mxu3 %v318_v43 }
  0xa3   :  { %510 = vmatmul.f32.vlgmr.msra.gmra.mxu1 %v316_v45 }
  0xa6   :  { %v252_v50 = vpop.f32.mrf.mxu0 }
  0xa7   :  { %v292_v49 = vpop.f32.mrf.mxu2  ;;  %v319_v53 = vadd.f32 %v252_v50, %v90_v47 }
  0xa8   :  { %v321_v52 = vadd.f32 %v292_v49, %v92_v46  ;;  %v312_v54 = vpop.f32.mrf.mxu3 }
  0xa9   :  { %v322_v55 = vadd.f32 %v312_v54, %v93_v48  ;;  %v272_v56 = vpop.f32.mrf.mxu1  ;;  %570 = vmatmul.f32.vlgmr.msrb.gmra.mxu0 %v319_v53 }
  0xaa   :  { %610 = vmatmul.f32.vlgmr.msrb.gmra.mxu2 %v321_v52  ;;  %v320_v57 = vadd.f32 %v272_v56, %v91_v51 }
  0xab   :  { %630 = vmatmul.f32.vlgmr.msrb.gmra.mxu3 %v322_v55 }
  0xac   :  { %590 = vmatmul.f32.vlgmr.msrb.gmra.mxu1 %v320_v57 }
 0x11d   :  { %v491_v59 = vpop.f32.mrf.mxu0 }
 0x11e   :  { %v492_v60 = vadd.f32 %v671_v58, %v491_v59 }
 0x120   :  { %v511_v61 = vpop.f32.mrf.mxu1 }
 0x121   :  { %v512_v62 = vadd.f32 %v511_v61, %v492_v60 }
 0x125   :  { %v531_v63 = vpop.f32.mrf.mxu2  ;;  %v551_v1 = vpop.f32.mrf.mxu3 }
 0x126   :  { %v532_v0 = vadd.f32 %v531_v63, %v512_v62  ;;  %v571_v2 = vpop.f32.mrf.mxu0 }
 0x128   :  { %v552_v3 = vadd.f32 %v551_v1, %v532_v0 }
 0x129   :  { %v591_v5 = vpop.f32.mrf.mxu1 }
 0x12a   :  { %v572_v4 = vadd.f32 %v571_v2, %v552_v3 }
 0x12c   :  { %v592_v6 = vadd.f32 %v591_v5, %v572_v4 }
 0x12d   :  { %v611_v7 = vpop.f32.mrf.mxu2 }
 0x12e   :  { %v612_v8 = vadd.f32 %v611_v7, %v592_v6  ;;  %v631_v9 = vpop.f32.mrf.mxu3 }
 0x130   :  { %v632_v10 = vadd.f32 %v631_v9, %v612_v8 }
 0x132   :  { %634 = vst [vmem:[#allocation11] sm:$0xff] %v632_v10 }
 0x133   :  { %645 = dma.vmem_to_hbm [thread:$0]  %s641_s16, 128, %s643_s19, [#allocation5]  }
 0x134   :  { %798 = dma.done.wait [#allocation5], 128  }
 0x135   :  { %799 = vsyncadd [#allocation5], 4294967168 }
 0x136   :  { %650 = vsyncpa [#allocation4], 1 }
 0x137   :  { %651 = vsyncpa [#allocation7], 1 }
 0x138   :  { %652 = vsyncpa [#allocation10], 1 }
 0x139   :  { %653 = vsyncpa [#allocation5], 1 }

</bundles_post_ra>
